<compile_context>
chip_gen: v5e
topology: v5e:2x2
jax: 0.10.0
libtpu: 0.0.40
codegen_flags: <defaults>
</compile_context>

<pallas_src>
import jax
import jax.numpy as jnp
import numpy as np
from jax import lax
from jax.experimental import pallas as pl
from jax.experimental.pallas import tpu as pltpu

_MXU_MIN_CH = 32   # below this, unrolled VPU FMAs beat a <2%-utilized MXU matmul


def _tree_sum(terms):
    """Pairwise (tree) reduction -- breaks long dependent add chains."""
    terms = list(terms)
    while len(terms) > 1:
        nxt = [terms[i] + terms[i + 1] for i in range(0, len(terms) - 1, 2)]
        if len(terms) % 2:
            nxt.append(terms[-1])
        terms = nxt
    return terms[0]


def _conv1x1(w_ref, x):
    """(co, ci) @ (ci, L) -> (co, L).  VPU FMA tree at tiny channel counts."""
    co, ci = w_ref.shape
    if co <= _MXU_MIN_CH or ci <= _MXU_MIN_CH:
        w = w_ref[...]
        return _tree_sum([w[:, c:c + 1] * x[c:c + 1, :] for c in range(ci)])
    # TODO(synk): at production channel counts feed bf16 operands on v6e/v7x
    # (keep preferred_element_type=jnp.float32).
    return jnp.dot(w_ref[...], x, preferred_element_type=jnp.float32)


def _make_kernel(W, L, left, cout, groups):
    """Single-step ShuffleBlock kernel over (C, L=N*H*W) tiles (shapes static)."""
    cpg = cout // groups

    def kernel(xl_ref, xr_ref, w1_ref, b1_ref, a1_ref,
               wd_ref, b2_ref, a2_ref, w3_ref, b3_ref, a3_ref,
               m_ref, o_ref):
        r = xr_ref[...]                                          # (cr_in, L)

        # ---- CBR: 1x1 conv (BN folded) + PReLU --------------------------------
        y = _conv1x1(w1_ref, r) + b1_ref[...]                    # (cr_out, L)
        y = jnp.where(y >= 0.0, y, y * a1_ref[...])

        # ---- DWSepConv part 1: depthwise 3x3, stride 1, pad 1 + PReLU ---------
        # XLU lane-rolls over the flattened spatial axis; wrapped lanes (image /
        # row / column boundaries) are zeroed by the precomputed (1, L) masks.
        terms = []
        for dh in (-1, 0, 1):
            for dw in (-1, 0, 1):
                t = (dh + 1) * 3 + (dw + 1)
                sh = dh * W + dw                                 # flattened offset
                shifted = y if sh == 0 else pltpu.roll(y, shift=(-sh) % L, axis=1)
                contrib = shifted * wd_ref[:, t:t + 1]           # per-channel tap
                if sh != 0:
                    contrib = contrib * m_ref[t:t + 1, :]        # (1, L) boundary mask
                terms.append(contrib)
        acc = _tree_sum(terms) + b2_ref[...]
        acc = jnp.where(acc >= 0.0, acc, acc * a2_ref[...])

        # ---- DWSepConv part 2: pointwise 1x1 (BN folded) + PReLU --------------
        z = _conv1x1(w3_ref, acc) + b3_ref[...]
        z = jnp.where(z >= 0.0, z, z * a3_ref[...])              # (cr_out, L)

        # ---- concat(left, right) + groups-2 channel shuffle, ONE full store ---
        # out channel j <- cat channel (j % groups) * cpg + j // groups
        lft = xl_ref[...]                                        # (left, L)
        rows = []
        for j in range(cout):
            p, g = j // groups, j % groups
            s = g * cpg + p
            rows.append(lft[s:s + 1, :] if s < left
                        else z[s - left:s - left + 1, :])
        # TODO(synk): emit bf16 here if the downstream consumer tolerates it.
        o_ref[...] = jnp.concatenate(rows, axis=0).astype(o_ref.dtype)

    return kernel


def _dw_tap_masks(N, H, W):
    """(9, N*H*W) float32 per-tap in-image validity masks (host precomputed)."""
    hh = np.arange(H).reshape(H, 1)
    ww = np.arange(W).reshape(1, W)
    masks = np.empty((9, H, W), np.float32)
    for dh in (-1, 0, 1):
        for dw in (-1, 0, 1):
            ok = np.ones((H, W), bool)
            if dh == -1:
                ok = ok & (hh >= 1)
            if dh == 1:
                ok = ok & (hh <= H - 2)
            if dw == -1:
                ok = ok & (ww >= 1)
            if dw == 1:
                ok = ok & (ww <= W - 2)
            masks[(dh + 1) * 3 + (dw + 1)] = ok
    return np.tile(masks.reshape(9, 1, H * W), (1, N, 1)).reshape(9, N * H * W)


def shuffle_block(x_nchw, params, *, left, groups=2):
    """ShuffleBlock forward. x_nchw: (N, Cin, H, W) float32. Returns NCHW."""
    w1, b1, a1, wd, b2, a2, w3, b3, a3 = params
    N, Cin, H, W = x_nchw.shape
    HW = H * W
    L = N * HW
    cr_in = Cin - left
    cr_out = w1.shape[1]
    cout = left + cr_out
    assert cout % groups == 0

    # Flatten batch onto the lane axis: (N, Cin, HW) -> (Cin, N*HW).
    # Tiny wrapper transpose; keeps every in-kernel op / store lane-dense.
    x_cf = jnp.transpose(x_nchw.reshape(N, Cin, HW).astype(jnp.float32),
                         (1, 0, 2)).reshape(Cin, L)
    # Pre-split so the kernel never sublane-slices the activation mid-tile.
    x_left, x_right = x_cf[:left], x_cf[left:]

    # Kernel-friendly parameter layouts (tiny one-off transforms).
    w1t = jnp.transpose(w1)                       # (cr_out, cr_in)
    w3t = jnp.transpose(w3)                       # (cr_out, cr_out)
    wdc = jnp.transpose(wd.reshape(9, cr_out))    # (cr_out, 9), col t = tap dy*3+dx
    col = lambda v: v.reshape(-1, 1)              # per-channel vectors -> columns
    b1c, a1c, b2c, a2c, b3c, a3c = map(col, (b1, a1, b2, a2, b3, a3))
    mask9 = jnp.asarray(_dw_tap_masks(N, H, W))   # (9, L)

    operands = (x_left, x_right, w1t, b1c, a1c, wdc, b2c, a2c, w3t, b3c, a3c, mask9)

    def full_spec(shape):
        r = len(shape)
        return pl.BlockSpec(shape, lambda i, _r=r: (0,) * _r)

    out_cf = pl.pallas_call(
        _make_kernel(W, L, left, cout, groups),
        out_shape=jax.ShapeDtypeStruct((cout, L), jnp.float32),
        grid_spec=pltpu.PrefetchScalarGridSpec(
            num_scalar_prefetch=0,
            grid=(1,),                            # whole batch in one step
            in_specs=[full_spec(op.shape) for op in operands],
            out_specs=full_spec((cout, L)),
        ),
        compiler_params=pltpu.CompilerParams(dimension_semantics=("arbitrary",)),
    )(*operands)

    # (cout, N*HW) -> NCHW (tiny inverse transpose; shuffle already applied).
    return jnp.transpose(out_cf.reshape(cout, N, HW), (1, 0, 2)).reshape(N, cout, H, W)


def init_params(key, inplanes, outplanes, c_tag=0.5, eps=1e-5):
    """Deterministic synthetic parameters with BatchNorm folded (eval mode)."""
    left = round(c_tag * inplanes)
    cr_in = inplanes - left
    cr_out = outplanes - left
    ks = jax.random.split(key, 15)

    def bn_fold(k0, k1, k2, k3, c):
        gamma = jax.random.uniform(k0, (c,), jnp.float32, 0.5, 1.5)
        beta = jax.random.uniform(k1, (c,), jnp.float32, -0.2, 0.2)
        mean = jax.random.uniform(k2, (c,), jnp.float32, -0.1, 0.1)
        var = jax.random.uniform(k3, (c,), jnp.float32, 0.5, 1.5)
        scale = gamma / jnp.sqrt(var + eps)
        return scale, beta - mean * scale

    # CBR: 1x1 conv (cr_in -> cr_out), BN, PReLU
    w1 = 0.2 * jax.random.normal(ks[0], (cr_in, cr_out), jnp.float32)
    s1, b1 = bn_fold(ks[1], ks[2], ks[3], ks[4], cr_out)
    w1 = w1 * s1[None, :]

    # DWSepConv: depthwise 3x3 (per-channel), BN, PReLU
    wd = 0.2 * jax.random.normal(ks[5], (3, 3, cr_out), jnp.float32)
    s2, b2 = bn_fold(ks[6], ks[7], ks[8], ks[9], cr_out)
    wd = wd * s2[None, None, :]

    # DWSepConv: pointwise 1x1 (cr_out -> cr_out), BN, PReLU
    w3 = 0.2 * jax.random.normal(ks[10], (cr_out, cr_out), jnp.float32)
    s3, b3 = bn_fold(ks[11], ks[12], ks[13], ks[14], cr_out)
    w3 = w3 * s3[None, :]

    a = jnp.full((cr_out,), 0.25, jnp.float32)        # nn.PReLU default init
    return (w1, b1, a, wd, b2, a, w3, b3, a)


def reference(x_nchw, params, *, left, groups=2):
    """Pure-JAX reference (same math, XLA convs) for correctness checking."""
    w1, b1, a1, wd, b2, a2, w3, b3, a3 = params
    x = jnp.transpose(x_nchw, (0, 2, 3, 1)).astype(jnp.float32)
    lft = x[..., :left]
    r = x[..., left:]
    cr_out = w1.shape[1]

    y = jnp.einsum('nhwc,cd->nhwd', r, w1) + b1.reshape(1, 1, 1, -1)
    y = jnp.where(y >= 0, y, y * a1.reshape(1, 1, 1, -1))

    dwk = wd.reshape(3, 3, 1, cr_out)
    y2 = lax.conv_general_dilated(
        y, dwk, window_strides=(1, 1), padding='SAME',
        dimension_numbers=('NHWC', 'HWIO', 'NHWC'),
        feature_group_count=cr_out) + b2.reshape(1, 1, 1, -1)
    y2 = jnp.where(y2 >= 0, y2, y2 * a2.reshape(1, 1, 1, -1))

    z = jnp.einsum('nhwd,de->nhwe', y2, w3) + b3.reshape(1, 1, 1, -1)
    z = jnp.where(z >= 0, z, z * a3.reshape(1, 1, 1, -1))

    cat = jnp.concatenate([lft, z], axis=-1)
    N, H, W, cout = cat.shape
    out = cat.reshape(N, H, W, groups, cout // groups)
    out = jnp.swapaxes(out, -1, -2).reshape(N, H, W, cout)
    return jnp.transpose(out, (0, 3, 1, 2))


if __name__ == "__main__":
    inplanes, outplanes = 8, 8
    N, H, W = 2, 16, 16
    c_tag = 0.5
    left = round(c_tag * inplanes)

    key = jax.random.PRNGKey(0)
    kx, kp = jax.random.split(key)
    x = jax.random.normal(kx, (N, inplanes, H, W), jnp.float32)
    params = init_params(kp, inplanes, outplanes, c_tag)

    out = shuffle_block(x, params, left=left)
    out = jax.block_until_ready(out)

    ref = reference(x, params, left=left)
    np.testing.assert_allclose(np.asarray(out), np.asarray(ref),
                               rtol=1e-4, atol=1e-4)
    print("KERNEL_OK")
</pallas_src>

<mosaic_0001>
module attributes {stable_mosaic.version = 11 : i64} {
  func.func @kernel(%arg0: i32, %arg1: memref<4x512xf32, #tpu.memory_space<vmem>>, %arg2: memref<4x512xf32, #tpu.memory_space<vmem>>, %arg3: memref<4x4xf32, #tpu.memory_space<vmem>>, %arg4: memref<4x1xf32, #tpu.memory_space<vmem>>, %arg5: memref<4x1xf32, #tpu.memory_space<vmem>>, %arg6: memref<4x9xf32, #tpu.memory_space<vmem>>, %arg7: memref<4x1xf32, #tpu.memory_space<vmem>>, %arg8: memref<4x1xf32, #tpu.memory_space<vmem>>, %arg9: memref<4x4xf32, #tpu.memory_space<vmem>>, %arg10: memref<4x1xf32, #tpu.memory_space<vmem>>, %arg11: memref<4x1xf32, #tpu.memory_space<vmem>>, %arg12: memref<9x512xf32, #tpu.memory_space<vmem>>, %arg13: memref<8x512xf32, #tpu.memory_space<vmem>>) attributes {dimension_semantics = [#tpu.dimension_semantics<arbitrary>], iteration_bounds = array<i64: 1>, scalar_prefetch = 0 : i64, scratch_operands = 0 : i64, tpu.core_type = #tpu.core_type<tc>, window_params = [{pipeline_mode = #tpu.pipeline_mode<synchronous>, transform_indices = @transform_0, window_bounds = array<i64: 4, 512>}, {pipeline_mode = #tpu.pipeline_mode<synchronous>, transform_indices = @transform_1, window_bounds = array<i64: 4, 512>}, {pipeline_mode = #tpu.pipeline_mode<synchronous>, transform_indices = @transform_2, window_bounds = array<i64: 4, 4>}, {pipeline_mode = #tpu.pipeline_mode<synchronous>, transform_indices = @transform_3, window_bounds = array<i64: 4, 1>}, {pipeline_mode = #tpu.pipeline_mode<synchronous>, transform_indices = @transform_4, window_bounds = array<i64: 4, 1>}, {pipeline_mode = #tpu.pipeline_mode<synchronous>, transform_indices = @transform_5, window_bounds = array<i64: 4, 9>}, {pipeline_mode = #tpu.pipeline_mode<synchronous>, transform_indices = @transform_6, window_bounds = array<i64: 4, 1>}, {pipeline_mode = #tpu.pipeline_mode<synchronous>, transform_indices = @transform_7, window_bounds = array<i64: 4, 1>}, {pipeline_mode = #tpu.pipeline_mode<synchronous>, transform_indices = @transform_8, window_bounds = array<i64: 4, 4>}, {pipeline_mode = #tpu.pipeline_mode<synchronous>, transform_indices = @transform_9, window_bounds = array<i64: 4, 1>}, {pipeline_mode = #tpu.pipeline_mode<synchronous>, transform_indices = @transform_10, window_bounds = array<i64: 4, 1>}, {pipeline_mode = #tpu.pipeline_mode<synchronous>, transform_indices = @transform_11, window_bounds = array<i64: 9, 512>}, {pipeline_mode = #tpu.pipeline_mode<synchronous>, transform_indices = @transform_12, window_bounds = array<i64: 8, 512>}]} {
    %c0 = arith.constant 0 : index
    %c0_0 = arith.constant 0 : index
    %0 = vector.load %arg2[%c0, %c0_0] : memref<4x512xf32, #tpu.memory_space<vmem>>, vector<4x512xf32>
    %c0_1 = arith.constant 0 : index
    %c0_2 = arith.constant 0 : index
    %1 = vector.load %arg3[%c0_1, %c0_2] : memref<4x4xf32, #tpu.memory_space<vmem>>, vector<4x4xf32>
    %2 = vector.extract_strided_slice %1 {offsets = [0, 0], sizes = [4, 1], strides = [1, 1]} : vector<4x4xf32> to vector<4x1xf32>
    %3 = vector.extract_strided_slice %0 {offsets = [0, 0], sizes = [1, 512], strides = [1, 1]} : vector<4x512xf32> to vector<1x512xf32>
    %4 = vector.broadcast %2 : vector<4x1xf32> to vector<4x512xf32>
    %5 = vector.broadcast %3 : vector<1x512xf32> to vector<4x512xf32>
    %6 = arith.mulf %4, %5 : vector<4x512xf32>
    %7 = vector.extract_strided_slice %1 {offsets = [0, 1], sizes = [4, 1], strides = [1, 1]} : vector<4x4xf32> to vector<4x1xf32>
    %8 = vector.extract_strided_slice %0 {offsets = [1, 0], sizes = [1, 512], strides = [1, 1]} : vector<4x512xf32> to vector<1x512xf32>
    %9 = vector.broadcast %7 : vector<4x1xf32> to vector<4x512xf32>
    %10 = vector.broadcast %8 : vector<1x512xf32> to vector<4x512xf32>
    %11 = arith.mulf %9, %10 : vector<4x512xf32>
    %12 = vector.extract_strided_slice %1 {offsets = [0, 2], sizes = [4, 1], strides = [1, 1]} : vector<4x4xf32> to vector<4x1xf32>
    %13 = vector.extract_strided_slice %0 {offsets = [2, 0], sizes = [1, 512], strides = [1, 1]} : vector<4x512xf32> to vector<1x512xf32>
    %14 = vector.broadcast %12 : vector<4x1xf32> to vector<4x512xf32>
    %15 = vector.broadcast %13 : vector<1x512xf32> to vector<4x512xf32>
    %16 = arith.mulf %14, %15 : vector<4x512xf32>
    %17 = vector.extract_strided_slice %1 {offsets = [0, 3], sizes = [4, 1], strides = [1, 1]} : vector<4x4xf32> to vector<4x1xf32>
    %18 = vector.extract_strided_slice %0 {offsets = [3, 0], sizes = [1, 512], strides = [1, 1]} : vector<4x512xf32> to vector<1x512xf32>
    %19 = vector.broadcast %17 : vector<4x1xf32> to vector<4x512xf32>
    %20 = vector.broadcast %18 : vector<1x512xf32> to vector<4x512xf32>
    %21 = arith.mulf %19, %20 : vector<4x512xf32>
    %22 = arith.addf %6, %11 : vector<4x512xf32>
    %23 = arith.addf %16, %21 : vector<4x512xf32>
    %24 = arith.addf %22, %23 : vector<4x512xf32>
    %c0_3 = arith.constant 0 : index
    %c0_4 = arith.constant 0 : index
    %25 = vector.load %arg4[%c0_3, %c0_4] : memref<4x1xf32, #tpu.memory_space<vmem>>, vector<4x1xf32>
    %26 = vector.broadcast %25 : vector<4x1xf32> to vector<4x512xf32>
    %27 = arith.addf %24, %26 : vector<4x512xf32>
    %cst = arith.constant 0.000000e+00 : f32
    %28 = vector.broadcast %cst : f32 to vector<4x512xf32>
    %29 = arith.cmpf oge, %27, %28 : vector<4x512xf32>
    %c0_5 = arith.constant 0 : index
    %c0_6 = arith.constant 0 : index
    %30 = vector.load %arg5[%c0_5, %c0_6] : memref<4x1xf32, #tpu.memory_space<vmem>>, vector<4x1xf32>
    %31 = vector.broadcast %30 : vector<4x1xf32> to vector<4x512xf32>
    %32 = arith.mulf %27, %31 : vector<4x512xf32>
    %33 = arith.select %29, %27, %32 : vector<4x512xi1>, vector<4x512xf32>
    %c17_i32 = arith.constant 17 : i32
    %34 = tpu.dynamic_rotate %33 by %c17_i32 dim 1 : vector<4x512xf32>, i32 -> vector<4x512xf32>
    %c0_7 = arith.constant 0 : index
    %c0_8 = arith.constant 0 : index
    %35 = vector.load %arg6[%c0_7, %c0_8] : memref<4x9xf32, #tpu.memory_space<vmem>>, vector<4x1xf32>
    %36 = vector.broadcast %35 : vector<4x1xf32> to vector<4x512xf32>
    %37 = arith.mulf %34, %36 : vector<4x512xf32>
    %c0_9 = arith.constant 0 : index
    %c0_10 = arith.constant 0 : index
    %38 = vector.load %arg12[%c0_9, %c0_10] : memref<9x512xf32, #tpu.memory_space<vmem>>, vector<1x512xf32>
    %39 = vector.broadcast %38 : vector<1x512xf32> to vector<4x512xf32>
    %40 = arith.mulf %37, %39 : vector<4x512xf32>
    %c16_i32 = arith.constant 16 : i32
    %41 = tpu.dynamic_rotate %33 by %c16_i32 dim 1 : vector<4x512xf32>, i32 -> vector<4x512xf32>
    %c0_11 = arith.constant 0 : index
    %c1 = arith.constant 1 : index
    %42 = vector.load %arg6[%c0_11, %c1] : memref<4x9xf32, #tpu.memory_space<vmem>>, vector<4x1xf32>
    %43 = vector.broadcast %42 : vector<4x1xf32> to vector<4x512xf32>
    %44 = arith.mulf %41, %43 : vector<4x512xf32>
    %c1_12 = arith.constant 1 : index
    %c0_13 = arith.constant 0 : index
    %45 = vector.load %arg12[%c1_12, %c0_13] : memref<9x512xf32, #tpu.memory_space<vmem>>, vector<1x512xf32>
    %46 = vector.broadcast %45 : vector<1x512xf32> to vector<4x512xf32>
    %47 = arith.mulf %44, %46 : vector<4x512xf32>
    %c15_i32 = arith.constant 15 : i32
    %48 = tpu.dynamic_rotate %33 by %c15_i32 dim 1 : vector<4x512xf32>, i32 -> vector<4x512xf32>
    %c0_14 = arith.constant 0 : index
    %c2 = arith.constant 2 : index
    %49 = vector.load %arg6[%c0_14, %c2] : memref<4x9xf32, #tpu.memory_space<vmem>>, vector<4x1xf32>
    %50 = vector.broadcast %49 : vector<4x1xf32> to vector<4x512xf32>
    %51 = arith.mulf %48, %50 : vector<4x512xf32>
    %c2_15 = arith.constant 2 : index
    %c0_16 = arith.constant 0 : index
    %52 = vector.load %arg12[%c2_15, %c0_16] : memref<9x512xf32, #tpu.memory_space<vmem>>, vector<1x512xf32>
    %53 = vector.broadcast %52 : vector<1x512xf32> to vector<4x512xf32>
    %54 = arith.mulf %51, %53 : vector<4x512xf32>
    %c1_i32 = arith.constant 1 : i32
    %55 = tpu.dynamic_rotate %33 by %c1_i32 dim 1 : vector<4x512xf32>, i32 -> vector<4x512xf32>
    %c0_17 = arith.constant 0 : index
    %c3 = arith.constant 3 : index
    %56 = vector.load %arg6[%c0_17, %c3] : memref<4x9xf32, #tpu.memory_space<vmem>>, vector<4x1xf32>
    %57 = vector.broadcast %56 : vector<4x1xf32> to vector<4x512xf32>
    %58 = arith.mulf %55, %57 : vector<4x512xf32>
    %c3_18 = arith.constant 3 : index
    %c0_19 = arith.constant 0 : index
    %59 = vector.load %arg12[%c3_18, %c0_19] : memref<9x512xf32, #tpu.memory_space<vmem>>, vector<1x512xf32>
    %60 = vector.broadcast %59 : vector<1x512xf32> to vector<4x512xf32>
    %61 = arith.mulf %58, %60 : vector<4x512xf32>
    %c0_20 = arith.constant 0 : index
    %c4 = arith.constant 4 : index
    %62 = vector.load %arg6[%c0_20, %c4] : memref<4x9xf32, #tpu.memory_space<vmem>>, vector<4x1xf32>
    %63 = vector.broadcast %62 : vector<4x1xf32> to vector<4x512xf32>
    %64 = arith.mulf %33, %63 : vector<4x512xf32>
    %c511_i32 = arith.constant 511 : i32
    %65 = tpu.dynamic_rotate %33 by %c511_i32 dim 1 : vector<4x512xf32>, i32 -> vector<4x512xf32>
    %c0_21 = arith.constant 0 : index
    %c5 = arith.constant 5 : index
    %66 = vector.load %arg6[%c0_21, %c5] : memref<4x9xf32, #tpu.memory_space<vmem>>, vector<4x1xf32>
    %67 = vector.broadcast %66 : vector<4x1xf32> to vector<4x512xf32>
    %68 = arith.mulf %65, %67 : vector<4x512xf32>
    %c5_22 = arith.constant 5 : index
    %c0_23 = arith.constant 0 : index
    %69 = vector.load %arg12[%c5_22, %c0_23] : memref<9x512xf32, #tpu.memory_space<vmem>>, vector<1x512xf32>
    %70 = vector.broadcast %69 : vector<1x512xf32> to vector<4x512xf32>
    %71 = arith.mulf %68, %70 : vector<4x512xf32>
    %c497_i32 = arith.constant 497 : i32
    %72 = tpu.dynamic_rotate %33 by %c497_i32 dim 1 : vector<4x512xf32>, i32 -> vector<4x512xf32>
    %c0_24 = arith.constant 0 : index
    %c6 = arith.constant 6 : index
    %73 = vector.load %arg6[%c0_24, %c6] : memref<4x9xf32, #tpu.memory_space<vmem>>, vector<4x1xf32>
    %74 = vector.broadcast %73 : vector<4x1xf32> to vector<4x512xf32>
    %75 = arith.mulf %72, %74 : vector<4x512xf32>
    %c6_25 = arith.constant 6 : index
    %c0_26 = arith.constant 0 : index
    %76 = vector.load %arg12[%c6_25, %c0_26] : memref<9x512xf32, #tpu.memory_space<vmem>>, vector<1x512xf32>
    %77 = vector.broadcast %76 : vector<1x512xf32> to vector<4x512xf32>
    %78 = arith.mulf %75, %77 : vector<4x512xf32>
    %c496_i32 = arith.constant 496 : i32
    %79 = tpu.dynamic_rotate %33 by %c496_i32 dim 1 : vector<4x512xf32>, i32 -> vector<4x512xf32>
    %c0_27 = arith.constant 0 : index
    %c7 = arith.constant 7 : index
    %80 = vector.load %arg6[%c0_27, %c7] : memref<4x9xf32, #tpu.memory_space<vmem>>, vector<4x1xf32>
    %81 = vector.broadcast %80 : vector<4x1xf32> to vector<4x512xf32>
    %82 = arith.mulf %79, %81 : vector<4x512xf32>
    %c7_28 = arith.constant 7 : index
    %c0_29 = arith.constant 0 : index
    %83 = vector.load %arg12[%c7_28, %c0_29] : memref<9x512xf32, #tpu.memory_space<vmem>>, vector<1x512xf32>
    %84 = vector.broadcast %83 : vector<1x512xf32> to vector<4x512xf32>
    %85 = arith.mulf %82, %84 : vector<4x512xf32>
    %c495_i32 = arith.constant 495 : i32
    %86 = tpu.dynamic_rotate %33 by %c495_i32 dim 1 : vector<4x512xf32>, i32 -> vector<4x512xf32>
    %c0_30 = arith.constant 0 : index
    %c8 = arith.constant 8 : index
    %87 = vector.load %arg6[%c0_30, %c8] : memref<4x9xf32, #tpu.memory_space<vmem>>, vector<4x1xf32>
    %88 = vector.broadcast %87 : vector<4x1xf32> to vector<4x512xf32>
    %89 = arith.mulf %86, %88 : vector<4x512xf32>
    %c8_31 = arith.constant 8 : index
    %c0_32 = arith.constant 0 : index
    %90 = vector.load %arg12[%c8_31, %c0_32] : memref<9x512xf32, #tpu.memory_space<vmem>>, vector<1x512xf32>
    %91 = vector.broadcast %90 : vector<1x512xf32> to vector<4x512xf32>
    %92 = arith.mulf %89, %91 : vector<4x512xf32>
    %93 = arith.addf %40, %47 : vector<4x512xf32>
    %94 = arith.addf %54, %61 : vector<4x512xf32>
    %95 = arith.addf %64, %71 : vector<4x512xf32>
    %96 = arith.addf %78, %85 : vector<4x512xf32>
    %97 = arith.addf %93, %94 : vector<4x512xf32>
    %98 = arith.addf %95, %96 : vector<4x512xf32>
    %99 = arith.addf %97, %98 : vector<4x512xf32>
    %100 = arith.addf %99, %92 : vector<4x512xf32>
    %c0_33 = arith.constant 0 : index
    %c0_34 = arith.constant 0 : index
    %101 = vector.load %arg7[%c0_33, %c0_34] : memref<4x1xf32, #tpu.memory_space<vmem>>, vector<4x1xf32>
    %102 = vector.broadcast %101 : vector<4x1xf32> to vector<4x512xf32>
    %103 = arith.addf %100, %102 : vector<4x512xf32>
    %cst_35 = arith.constant 0.000000e+00 : f32
    %104 = vector.broadcast %cst_35 : f32 to vector<4x512xf32>
    %105 = arith.cmpf oge, %103, %104 : vector<4x512xf32>
    %c0_36 = arith.constant 0 : index
    %c0_37 = arith.constant 0 : index
    %106 = vector.load %arg8[%c0_36, %c0_37] : memref<4x1xf32, #tpu.memory_space<vmem>>, vector<4x1xf32>
    %107 = vector.broadcast %106 : vector<4x1xf32> to vector<4x512xf32>
    %108 = arith.mulf %103, %107 : vector<4x512xf32>
    %109 = arith.select %105, %103, %108 : vector<4x512xi1>, vector<4x512xf32>
    %c0_38 = arith.constant 0 : index
    %c0_39 = arith.constant 0 : index
    %110 = vector.load %arg9[%c0_38, %c0_39] : memref<4x4xf32, #tpu.memory_space<vmem>>, vector<4x4xf32>
    %111 = vector.extract_strided_slice %110 {offsets = [0, 0], sizes = [4, 1], strides = [1, 1]} : vector<4x4xf32> to vector<4x1xf32>
    %112 = vector.extract_strided_slice %109 {offsets = [0, 0], sizes = [1, 512], strides = [1, 1]} : vector<4x512xf32> to vector<1x512xf32>
    %113 = vector.broadcast %111 : vector<4x1xf32> to vector<4x512xf32>
    %114 = vector.broadcast %112 : vector<1x512xf32> to vector<4x512xf32>
    %115 = arith.mulf %113, %114 : vector<4x512xf32>
    %116 = vector.extract_strided_slice %110 {offsets = [0, 1], sizes = [4, 1], strides = [1, 1]} : vector<4x4xf32> to vector<4x1xf32>
    %117 = vector.extract_strided_slice %109 {offsets = [1, 0], sizes = [1, 512], strides = [1, 1]} : vector<4x512xf32> to vector<1x512xf32>
    %118 = vector.broadcast %116 : vector<4x1xf32> to vector<4x512xf32>
    %119 = vector.broadcast %117 : vector<1x512xf32> to vector<4x512xf32>
    %120 = arith.mulf %118, %119 : vector<4x512xf32>
    %121 = vector.extract_strided_slice %110 {offsets = [0, 2], sizes = [4, 1], strides = [1, 1]} : vector<4x4xf32> to vector<4x1xf32>
    %122 = vector.extract_strided_slice %109 {offsets = [2, 0], sizes = [1, 512], strides = [1, 1]} : vector<4x512xf32> to vector<1x512xf32>
    %123 = vector.broadcast %121 : vector<4x1xf32> to vector<4x512xf32>
    %124 = vector.broadcast %122 : vector<1x512xf32> to vector<4x512xf32>
    %125 = arith.mulf %123, %124 : vector<4x512xf32>
    %126 = vector.extract_strided_slice %110 {offsets = [0, 3], sizes = [4, 1], strides = [1, 1]} : vector<4x4xf32> to vector<4x1xf32>
    %127 = vector.extract_strided_slice %109 {offsets = [3, 0], sizes = [1, 512], strides = [1, 1]} : vector<4x512xf32> to vector<1x512xf32>
    %128 = vector.broadcast %126 : vector<4x1xf32> to vector<4x512xf32>
    %129 = vector.broadcast %127 : vector<1x512xf32> to vector<4x512xf32>
    %130 = arith.mulf %128, %129 : vector<4x512xf32>
    %131 = arith.addf %115, %120 : vector<4x512xf32>
    %132 = arith.addf %125, %130 : vector<4x512xf32>
    %133 = arith.addf %131, %132 : vector<4x512xf32>
    %c0_40 = arith.constant 0 : index
    %c0_41 = arith.constant 0 : index
    %134 = vector.load %arg10[%c0_40, %c0_41] : memref<4x1xf32, #tpu.memory_space<vmem>>, vector<4x1xf32>
    %135 = vector.broadcast %134 : vector<4x1xf32> to vector<4x512xf32>
    %136 = arith.addf %133, %135 : vector<4x512xf32>
    %cst_42 = arith.constant 0.000000e+00 : f32
    %137 = vector.broadcast %cst_42 : f32 to vector<4x512xf32>
    %138 = arith.cmpf oge, %136, %137 : vector<4x512xf32>
    %c0_43 = arith.constant 0 : index
    %c0_44 = arith.constant 0 : index
    %139 = vector.load %arg11[%c0_43, %c0_44] : memref<4x1xf32, #tpu.memory_space<vmem>>, vector<4x1xf32>
    %140 = vector.broadcast %139 : vector<4x1xf32> to vector<4x512xf32>
    %141 = arith.mulf %136, %140 : vector<4x512xf32>
    %142 = arith.select %138, %136, %141 : vector<4x512xi1>, vector<4x512xf32>
    %c0_45 = arith.constant 0 : index
    %c0_46 = arith.constant 0 : index
    %143 = vector.load %arg1[%c0_45, %c0_46] : memref<4x512xf32, #tpu.memory_space<vmem>>, vector<4x512xf32>
    %144 = vector.extract_strided_slice %143 {offsets = [0, 0], sizes = [1, 512], strides = [1, 1]} : vector<4x512xf32> to vector<1x512xf32>
    %145 = vector.extract_strided_slice %142 {offsets = [0, 0], sizes = [1, 512], strides = [1, 1]} : vector<4x512xf32> to vector<1x512xf32>
    %146 = vector.extract_strided_slice %143 {offsets = [1, 0], sizes = [1, 512], strides = [1, 1]} : vector<4x512xf32> to vector<1x512xf32>
    %147 = vector.extract_strided_slice %142 {offsets = [1, 0], sizes = [1, 512], strides = [1, 1]} : vector<4x512xf32> to vector<1x512xf32>
    %148 = vector.extract_strided_slice %143 {offsets = [2, 0], sizes = [1, 512], strides = [1, 1]} : vector<4x512xf32> to vector<1x512xf32>
    %149 = vector.extract_strided_slice %142 {offsets = [2, 0], sizes = [1, 512], strides = [1, 1]} : vector<4x512xf32> to vector<1x512xf32>
    %150 = vector.extract_strided_slice %143 {offsets = [3, 0], sizes = [1, 512], strides = [1, 1]} : vector<4x512xf32> to vector<1x512xf32>
    %151 = vector.extract_strided_slice %142 {offsets = [3, 0], sizes = [1, 512], strides = [1, 1]} : vector<4x512xf32> to vector<1x512xf32>
    %152 = tpu.concatenate %144, %145, %146, %147, %148, %149, %150, %151 in 0 : vector<1x512xf32>, vector<1x512xf32>, vector<1x512xf32>, vector<1x512xf32>, vector<1x512xf32>, vector<1x512xf32>, vector<1x512xf32>, vector<1x512xf32> -> vector<8x512xf32>
    %c0_47 = arith.constant 0 : index
    %c0_48 = arith.constant 0 : index
    %153 = vector.load %arg13[%c0_47, %c0_48] : memref<8x512xf32, #tpu.memory_space<vmem>>, vector<8x512xf32>
    tpu.vector_store %arg13[%c0_47, %c0_48], %152 {strides = array<i32>} : memref<8x512xf32, #tpu.memory_space<vmem>>, vector<8x512xf32>,
    return
  }
  func.func @transform_0(%arg0: i32) -> (i32, i32) {
    %c0_i32 = arith.constant 0 : i32
    %c0_i32_0 = arith.constant 0 : i32
    %c0_i32_1 = arith.constant 0 : i32
    return %c0_i32, %c0_i32_0 : i32, i32
  }
  func.func @transform_1(%arg0: i32) -> (i32, i32) {
    %c0_i32 = arith.constant 0 : i32
    %c0_i32_0 = arith.constant 0 : i32
    %c0_i32_1 = arith.constant 0 : i32
    return %c0_i32, %c0_i32_0 : i32, i32
  }
  func.func @transform_2(%arg0: i32) -> (i32, i32) {
    %c0_i32 = arith.constant 0 : i32
    %c0_i32_0 = arith.constant 0 : i32
    %c0_i32_1 = arith.constant 0 : i32
    return %c0_i32, %c0_i32_0 : i32, i32
  }
  func.func @transform_3(%arg0: i32) -> (i32, i32) {
    %c0_i32 = arith.constant 0 : i32
    %c0_i32_0 = arith.constant 0 : i32
    %c0_i32_1 = arith.constant 0 : i32
    return %c0_i32, %c0_i32_0 : i32, i32
  }
  func.func @transform_4(%arg0: i32) -> (i32, i32) {
    %c0_i32 = arith.constant 0 : i32
    %c0_i32_0 = arith.constant 0 : i32
    %c0_i32_1 = arith.constant 0 : i32
    return %c0_i32, %c0_i32_0 : i32, i32
  }
  func.func @transform_5(%arg0: i32) -> (i32, i32) {
    %c0_i32 = arith.constant 0 : i32
    %c0_i32_0 = arith.constant 0 : i32
    %c0_i32_1 = arith.constant 0 : i32
    return %c0_i32, %c0_i32_0 : i32, i32
  }
  func.func @transform_6(%arg0: i32) -> (i32, i32) {
    %c0_i32 = arith.constant 0 : i32
    %c0_i32_0 = arith.constant 0 : i32
    %c0_i32_1 = arith.constant 0 : i32
    return %c0_i32, %c0_i32_0 : i32, i32
  }
  func.func @transform_7(%arg0: i32) -> (i32, i32) {
    %c0_i32 = arith.constant 0 : i32
    %c0_i32_0 = arith.constant 0 : i32
    %c0_i32_1 = arith.constant 0 : i32
    return %c0_i32, %c0_i32_0 : i32, i32
  }
  func.func @transform_8(%arg0: i32) -> (i32, i32) {
    %c0_i32 = arith.constant 0 : i32
    %c0_i32_0 = arith.constant 0 : i32
    %c0_i32_1 = arith.constant 0 : i32
    return %c0_i32, %c0_i32_0 : i32, i32
  }
  func.func @transform_9(%arg0: i32) -> (i32, i32) {
    %c0_i32 = arith.constant 0 : i32
    %c0_i32_0 = arith.constant 0 : i32
    %c0_i32_1 = arith.constant 0 : i32
    return %c0_i32, %c0_i32_0 : i32, i32
  }
  func.func @transform_10(%arg0: i32) -> (i32, i32) {
    %c0_i32 = arith.constant 0 : i32
    %c0_i32_0 = arith.constant 0 : i32
    %c0_i32_1 = arith.constant 0 : i32
    return %c0_i32, %c0_i32_0 : i32, i32
  }
  func.func @transform_11(%arg0: i32) -> (i32, i32) {
    %c0_i32 = arith.constant 0 : i32
    %c0_i32_0 = arith.constant 0 : i32
    %c0_i32_1 = arith.constant 0 : i32
    return %c0_i32, %c0_i32_0 : i32, i32
  }
  func.func @transform_12(%arg0: i32) -> (i32, i32) {
    %c0_i32 = arith.constant 0 : i32
    %c0_i32_0 = arith.constant 0 : i32
    %c0_i32_1 = arith.constant 0 : i32
    return %c0_i32, %c0_i32_0 : i32, i32
  }
}

</mosaic_0001>

<bundles_post_ra>
// kernel: tpu_custom_call.1
= control target key start
LH: loop header
LB: loop body
LE: loop exit
PB: predicated region body
PF: predicated region fallthrough
CT: control target
= control target key end

     0   :  { %17 = vsyncpa [#allocation3], 0  ;;  %s1327_s0 = inlined_call_operand.hbm [shape: f32[4,512], index: 0, kind: input, shape index: {}]   ;;  %s1328_s1 = inlined_call_operand.hbm [shape: f32[4,512], index: 1, kind: input, shape index: {}]   ;;  %s1329_s2 = inlined_call_operand.vmem [shape: f32[4,4], index: 2, kind: input, shape index: {}]   ;;  %s1330_s3 = inlined_call_operand.vmem [shape: f32[4,1], index: 3, kind: input, shape index: {}]   ;;  %s1331_s4 = inlined_call_operand.vmem [shape: f32[4,1], index: 4, kind: input, shape index: {}]   ;;  %s1332_s5 = inlined_call_operand.vmem [shape: f32[4,9], index: 5, kind: input, shape index: {}]   ;;  %s1333_s6 = inlined_call_operand.vmem [shape: f32[4,1], index: 6, kind: input, shape index: {}]   ;;  %s1334_s7 = inlined_call_operand.vmem [shape: f32[4,1], index: 7, kind: input, shape index: {}]   ;;  %s1335_s8 = inlined_call_operand.vmem [shape: f32[4,4], index: 8, kind: input, shape index: {}]   ;;  %s1336_s9 = inlined_call_operand.vmem [shape: f32[4,1], index: 9, kind: input, shape index: {}]   ;;  %s1337_s10 = inlined_call_operand.vmem [shape: f32[4,1], index: 10, kind: input, shape index: {}]   ;;  %s1338_s11 = inlined_call_operand.hbm [shape: f32[9,512], index: 11, kind: input, shape index: {}]   ;;  %s1339_s12 = inlined_call_operand.hbm [shape: f32[8,512], index: 12, kind: output, shape index: {}]  }
   0x1   :  { %18 = vsyncpa [#allocation6], 0  ;;  %s36_s23 = sshll.u32 %s1328_s1, 4  ;;  %s37_s23 = int_to_ptr.hbm [resolvable:$true] %s36_s23 }
   0x2   :  { %19 = vsyncpa [#allocation4], 0  ;;  %s934_s24 = smov [#allocation5]   ;;  %s25_s28 = sshll.u32 %s1327_s0, 4  ;;  %s26_s28 = int_to_ptr.hbm [resolvable:$true] %s25_s28 }
   0x3   :  { %s38_s25 = sshll.u32 %s934_s24, 4  ;;  %s935_s29 = smov [#allocation2]   ;;  %s39_s25 = int_to_ptr.vmem [resolvable:$true] %s38_s25 }
   0x4   :  { %41 = dma.hbm_to_vmem [thread:$0]  %s37_s23, 256, %s39_s25, [#allocation6]  }
   0x5   :  { %s27_s30 = sshll.u32 %s935_s29, 4  ;;  %s64_s15 = sshll.u32 %s1338_s11, 4  ;;  %s28_s30 = int_to_ptr.vmem [resolvable:$true] %s27_s30  ;;  %s65_s15 = int_to_ptr.hbm [resolvable:$true] %s64_s15 }
   0x6   :  { %30 = dma.hbm_to_vmem [thread:$0]  %s26_s28, 256, %s28_s30, [#allocation3]  }
   0x7   :  { %s936_s1 = smov [#allocation7]   ;;  %s937_s17 = smov 512  }
   0x8   :  { %s66_s16 = sshll.u32 %s936_s1, 4  ;;  %s938_s18 = smov 32   ;;  %s67_s16 = int_to_ptr.vmem [resolvable:$true] %s66_s16 }
   0x9   :  { %72 = dma.hbm_to_vmem [thread:$0]  %s65_s15, 1024, %s67_s16, [#allocation6], %s937_s17, %s937_s17, %s938_s18  }
   0xa   :  { %928 = dma.done.wait [#allocation3], 256  }
   0xb   :  { %929 = vsyncadd [#allocation3], 4294967040 }
   0xc   :  { %930 = dma.done.wait [#allocation6], 1280  }
   0xd   :  { %931 = vsyncadd [#allocation6], 4294966016  ;;  %v939_v0 = vmov 2   ;;  %v940_v1 = vmov 0   ;;  %v87_v2 = vld [vmem:[%s1329_s2] sm:$0xf] }
   0xe   :  { %814 = vset.pattern.permute.xlu1 %v939_v0  ;;  %812 = vset.pattern.permute.xlu0 %v940_v1  ;;  %v183_v3 = vld [vmem:[%s1330_s3] sm:$0xf]  ;;  %v941_v5 = vmov 3   ;;  %v942_v6 = vmov 1   ;;  %v943_v8 = vmov 4   ;;  %v944_v9 = vmov 6  }
   0xf   :  { %816 = vset.pattern.permute.xlu2 %v940_v1  ;;  %132 = vperm.xlu1 %814, %v87_v2   ;;  %v197_v4 = vld [vmem:[%s1331_s4] sm:$0xf]  ;;  %v945_v10 = vmov 5   ;;  %v946_v11 = vmov 7   ;;  %v85_v12 = vld [vmem:[#allocation5] sm:$0xff]  ;;  %v86_v13 = vld [vmem:[#allocation5 + $0x8] sm:$0xff] }
  0x10   :  { %90 = vperm.xlu0 %812, %v87_v2   ;;  %186 = vperm.xlu2 %816, %v183_v3   ;;  %v1048_v7 = vld [vmem:[%s1332_s5] sm:$0xf]  ;;  %v135_v15 = vperm.slane %v85_v12, 2  ;;  %v136_v16 = vperm.slane %v85_v12, 6  ;;  %v137_v18 = vperm.slane %v86_v13, 2  ;;  %v95_v19 = vperm.slane %v85_v12, 0 }
  0x11   :  { %v96_v20 = vperm.slane %v85_v12, 4  ;;  %v97_v21 = vperm.slane %v86_v13, 0  ;;  %v155_v22 = vperm.slane %v85_v12, 3  ;;  %v156_v23 = vperm.slane %v85_v12, 7  ;;  %s947_s3 = smov 17   ;;  %s948_s4 = smov 16  }
  0x12   :  { %v157_v24 = vperm.slane %v86_v13, 3  ;;  %v158_v25 = vperm.slane %v86_v13, 7  ;;  %v115_v26 = vperm.slane %v85_v12, 1  ;;  %v116_v27 = vperm.slane %v85_v12, 5  ;;  %s949_s5 = smov 15   ;;  %s950_s24 = smov 1  }
  0x13   :  { %v117_v28 = vperm.slane %v86_v13, 1  ;;  %v118_v29 = vperm.slane %v86_v13, 5  ;;  %v138_v30 = vperm.slane %v86_v13, 6  ;;  %v143_v31 = vperm.slane %v135_v15, 2  ;;  %s951_s25 = smov 127   ;;  %s952_s26 = smov 113  }
  0x14   :  { %v144_v32 = vperm.slane %v136_v16, 2  ;;  %v98_v33 = vperm.slane %v86_v13, 4  ;;  %v145_v34 = vperm.slane %v137_v18, 2  ;;  %v103_v35 = vperm.slane %v95_v19, 0  ;;  %s954_s27 = smov 112   ;;  %s955_s30 = smov 111  }
  0x15   :  { %v104_v36 = vperm.slane %v96_v20, 0  ;;  %v105_v37 = vperm.slane %v97_v21, 0  ;;  %v163_v38 = vperm.slane %v155_v22, 3  ;;  %v164_v39 = vperm.slane %v156_v23, 3  ;;  %s778_s0 = sshll.u32 %s1339_s12, 4  ;;  %s779_s0 = int_to_ptr.hbm [resolvable:$true] %s778_s0 }
  0x16   :  { %v165_v40 = vperm.slane %v157_v24, 3  ;;  %v166_v41 = vperm.slane %v158_v25, 3  ;;  %v123_v42 = vperm.slane %v115_v26, 1  ;;  %v124_v43 = vperm.slane %v116_v27, 1 }
  0x17   :  { %815 = vset.pattern.permute.xlu1 %v941_v5  ;;  %v125_v44 = vperm.slane %v117_v28, 1  ;;  %v126_v45 = vperm.slane %v118_v29, 1  ;;  %v146_v47 = vperm.slane %v138_v30, 2  ;;  %v106_v50 = vperm.slane %v98_v33, 0 }
  0x18   :  { %813 = vset.pattern.permute.xlu0 %v942_v6  ;;  %152 = vperm.xlu1 %815, %v87_v2   ;;  %v953_v33 = vmov 8  }
  0x19   :  { %112 = vperm.xlu0 %813, %v87_v2   ;;  %200 = vperm.xlu2 %816, %v197_v4  }
  0x20   :  { %817 = vset.pattern.permute.xlu1 %v942_v6 }
  0x21   :  { %818 = vset.pattern.permute.xlu0 %v939_v0  ;;  %264 = vperm.xlu1 %817, %v1048_v7  }
  0x22   :  { %229 = vperm.xlu2 %816, %v1048_v7   ;;  %300 = vperm.xlu0 %818, %v1048_v7  }
  0x29   :  { %820 = vset.pattern.permute.xlu1 %v943_v8 }
  0x2a   :  { %359 = vperm.xlu1 %820, %v1048_v7   ;;  %819 = vset.pattern.permute.xlu0 %v941_v5 }
  0x2b   :  { %336 = vperm.xlu0 %819, %v1048_v7  }
  0x32   :  { %821 = vset.pattern.permute.xlu1 %v945_v10 }
  0x33   :  { %822 = vset.pattern.permute.xlu0 %v944_v9  ;;  %380 = vperm.xlu1 %821, %v1048_v7  }
  0x34   :  { %416 = vperm.xlu0 %822, %v1048_v7  }
  0x3b   :  { %825 = vset.pattern.permute.xlu1 %v940_v1 }
  0x3c   :  { %823 = vset.pattern.permute.xlu0 %v946_v11 }
  0x3d   :  { %452 = vperm.xlu0 %823, %v1048_v7  }
  0x45   :  { %824 = vset.pattern.permute.xlu0 %v953_v33 }
  0x6a   :  { %v187_v46 = vpop.permute.xlu2 %186 }
  0x73   :  { %v201_v24 = vpop.permute.xlu2 %200 }
  0x81   :  { %v133_v14 = vpop.permute.xlu1 %132 }
  0x82   :  { %v91_v17 = vpop.permute.xlu0 %90  ;;  %v147_v48 = vmul.f32 %v143_v31, %v133_v14  ;;  %v148_v49 = vmul.f32 %v144_v32, %v133_v14  ;;  %v149_v51 = vmul.f32 %v145_v34, %v133_v14  ;;  %v150_v3 = vmul.f32 %v146_v47, %v133_v14  ;;  %v570_v34 = vld [vmem:[%s1335_s8] sm:$0xf] }
  0x83   :  { %v107_v52 = vmul.f32 %v103_v35, %v91_v17  ;;  %v108_v53 = vmul.f32 %v104_v36, %v91_v17  ;;  %v109_v54 = vmul.f32 %v105_v37, %v91_v17  ;;  %v110_v10 = vmul.f32 %v106_v50, %v91_v17  ;;  %v556_v47 = vld [vmem:[%s1334_s7] sm:$0xf] }
  0x8a   :  { %v153_v55 = vpop.permute.xlu1 %152 }
  0x8b   :  { %v113_v56 = vpop.permute.xlu0 %112  ;;  %v167_v57 = vmul.f32 %v163_v38, %v153_v55  ;;  %v168_v58 = vmul.f32 %v164_v39, %v153_v55  ;;  %v169_v59 = vmul.f32 %v165_v40, %v153_v55  ;;  %v170_v60 = vmul.f32 %v166_v41, %v153_v55  ;;  %v542_v38 = vld [vmem:[%s1333_s6] sm:$0xf] }
  0x8c   :  { %v127_v61 = vmul.f32 %v123_v42, %v113_v56  ;;  %v128_v62 = vmul.f32 %v124_v43, %v113_v56  ;;  %v129_v63 = vmul.f32 %v125_v44, %v113_v56  ;;  %v130_v2 = vmul.f32 %v126_v45, %v113_v56 }
  0x8d   :  { %v175_v4 = vadd.f32 %v167_v57, %v147_v48  ;;  %v176_v8 = vadd.f32 %v168_v58, %v148_v49  ;;  %v177_v9 = vadd.f32 %v169_v59, %v149_v51  ;;  %v178_v15 = vadd.f32 %v170_v60, %v150_v3 }
  0x8e   :  { %v171_v11 = vadd.f32 %v127_v61, %v107_v52  ;;  %v172_v12 = vadd.f32 %v128_v62, %v108_v53  ;;  %v173_v13 = vadd.f32 %v129_v63, %v109_v54  ;;  %v174_v16 = vadd.f32 %v130_v2, %v110_v10  ;;  %v236_v63 = vld [vmem:[#allocation7] ss:$8 sm:$0xf]  ;;  %v272_v2 = vld [vmem:[#allocation7 + $0x1] ss:$8 sm:$0xf] }
  0x8f   :  { %v219_v43 = vlaneseq  ;;  %v240_v3 = vperm.slane %v236_v63, 2 }
  0x90   :  { %v179_v18 = vadd.f32 %v175_v4, %v171_v11  ;;  %v180_v19 = vadd.f32 %v176_v8, %v172_v12  ;;  %v181_v20 = vadd.f32 %v177_v9, %v173_v13  ;;  %v182_v25 = vadd.f32 %v178_v15, %v174_v16 }
  0x91   :  { %v241_v4 = vperm.slane %v236_v63, 3  ;;  %v277_v9 = vperm.slane %v272_v2, 3  ;;  %v239_v11 = vperm.slane %v236_v63, 1  ;;  %v275_v13 = vperm.slane %v272_v2, 1 }
  0x92   :  { %v189_v21 = vadd.f32 %v187_v46, %v179_v18  ;;  %v190_v22 = vadd.f32 %v187_v46, %v180_v19  ;;  %v191_v23 = vadd.f32 %v187_v46, %v181_v20  ;;  %v192_v30 = vadd.f32 %v187_v46, %v182_v25 }
  0x93   :  { %v1108_v36 = vpop.permute.xlu1 %264  ;;  %v1127_v46 = vand.u32 127, %v219_v43  ;;  %v276_v15 = vperm.slane %v272_v2, 2 }
  0x94   :  { %vm193_vm0 = vcmp.ge.f32.partialorder %v189_v21, 0.0  ;;  %vm194_vm1 = vcmp.ge.f32.partialorder %v190_v22, 0.0  ;;  %vm195_vm2 = vcmp.ge.f32.partialorder %v191_v23, 0.0  ;;  %v203_v14 = vmul.f32 %v201_v24, %v189_v21 }
  0x95   :  { %v204_v26 = vmul.f32 %v201_v24, %v190_v22  ;;  %v205_v27 = vmul.f32 %v201_v24, %v191_v23  ;;  %v206_v31 = vmul.f32 %v201_v24, %v192_v30  ;;  %vm196_vm3 = vcmp.ge.f32.partialorder %v192_v30, 0.0 }
  0x96   :  { %v1062_v17 = vsel %vm193_vm0, %v189_v21, %v203_v14  ;;  %vm221_vm4 = vcmp.lt.s32.totalorder %v1127_v46, 17  ;;  %vm294_vm5 = vcmp.lt.s32.totalorder %v1127_v46, 15  ;;  %vm258_vm6 = vcmp.lt.s32.totalorder %v1127_v46, 16 }
  0x97   :  { %v1064_v28 = vsel %vm194_vm1, %v190_v22, %v204_v26  ;;  %v1066_v29 = vsel %vm195_vm2, %v191_v23, %v205_v27  ;;  %211 = vrot.lane.b32.xlu1 %v1062_v17, %s947_s3  ;;  %v1071_v32 = vsel %vm196_vm3, %v192_v30, %v206_v31  ;;  %vm330_vm7 = vcmp.lt.s32.totalorder %v1127_v46, 1 }
  0x98   :  { %215 = vrot.lane.b32.xlu0 %v1066_v29, %s947_s3  ;;  %213 = vrot.lane.b32.xlu2 %v1064_v28, %s947_s3  ;;  %vm374_vm8 = vcmp.lt.s32.totalorder %v1127_v46, 127  ;;  %vm410_vm9 = vcmp.lt.s32.totalorder %v1127_v46, 113  ;;  %vm446_vm10 = vcmp.lt.s32.totalorder %v1127_v46, 112  ;;  %vm482_vm11 = vcmp.lt.s32.totalorder %v1127_v46, 111 }
  0x99   :  { %vm732_vm0 = vcmask 1040384   ;;  %vm737_vm1 = vcmask 1041408   ;;  %vm742_vm2 = vcmask 1042432   ;;  %vm747_vm3 = vcmask 1043456  }
  0x9c   :  { %v1118_v40 = vpop.permute.xlu1 %359 }
  0x9f   :  { %217 = vrot.lane.b32.xlu1 %v1071_v32, %s947_s3 }
  0xa0   :  { %254 = vrot.lane.b32.xlu2 %v1066_v29, %s948_s4  ;;  %250 = vrot.lane.b32.xlu0 %v1062_v17, %s948_s4 }
  0xa5   :  { %v1123_v44 = vpop.permute.xlu1 %380 }
  0xa7   :  { %252 = vrot.lane.b32.xlu1 %v1064_v28, %s948_s4 }
  0xa8   :  { %286 = vrot.lane.b32.xlu2 %v1062_v17, %s949_s5  ;;  %256 = vrot.lane.b32.xlu0 %v1071_v32, %s948_s4 }
  0xaf   :  { %290 = vrot.lane.b32.xlu1 %v1066_v29, %s949_s5 }
  0xb0   :  { %292 = vrot.lane.b32.xlu2 %v1071_v32, %s949_s5  ;;  %288 = vrot.lane.b32.xlu0 %v1064_v28, %s949_s5 }
  0xb7   :  { %322 = vrot.lane.b32.xlu1 %v1062_v17, %s950_s24 }
  0xb8   :  { %324 = vrot.lane.b32.xlu2 %v1064_v28, %s950_s24  ;;  %372 = vrot.lane.b32.xlu0 %v1071_v32, %s951_s25 }
  0xbf   :  { %326 = vrot.lane.b32.xlu1 %v1066_v29, %s950_s24 }
  0xc0   :  { %328 = vrot.lane.b32.xlu2 %v1071_v32, %s950_s24  ;;  %404 = vrot.lane.b32.xlu0 %v1064_v28, %s952_s26 }
  0xc7   :  { %368 = vrot.lane.b32.xlu1 %v1064_v28, %s951_s25 }
  0xc8   :  { %366 = vrot.lane.b32.xlu2 %v1062_v17, %s951_s25  ;;  %488 = vperm.xlu0 %824, %v1048_v7   ;;  %v1101_v7 = vpop.permute.xlu0 %300 }
  0xcf   :  { %406 = vrot.lane.b32.xlu1 %v1066_v29, %s952_s26 }
  0xd0   :  { %370 = vrot.lane.b32.xlu2 %v1066_v29, %s951_s25  ;;  %827 = vset.pattern.permute.xlu0 %v939_v0  ;;  %v230_v0 = vpop.permute.xlu2 %229  ;;  %v1106_v35 = vpop.permute.xlu0 %336 }
  0xd1   :  { %597 = vperm.xlu0 %827, %v570_v34  }
  0xd7   :  { %438 = vrot.lane.b32.xlu1 %v1062_v17, %s954_s27 }
  0xd8   :  { %402 = vrot.lane.b32.xlu2 %v1062_v17, %s952_s26  ;;  %v1115_v39 = vpop.permute.xlu0 %416 }
  0xd9   :  { %831 = vset.pattern.permute.xlu0 %v940_v1 }
  0xdf   :  { %442 = vrot.lane.b32.xlu1 %v1066_v29, %s954_s27 }
  0xe0   :  { %408 = vrot.lane.b32.xlu2 %v1071_v32, %s952_s26  ;;  %v1121_v42 = vpop.permute.xlu0 %452 }
  0xe7   :  { %474 = vrot.lane.b32.xlu1 %v1062_v17, %s955_s30 }
  0xe8   :  { %440 = vrot.lane.b32.xlu2 %v1064_v28, %s954_s27 }
  0xef   :  { %478 = vrot.lane.b32.xlu1 %v1066_v29, %s955_s30 }
  0xf0   :  { %444 = vrot.lane.b32.xlu2 %v1071_v32, %s954_s27 }
  0xf2   :  { %v214_v37 = vpop.permute.xlu2 %213 }
  0xf7   :  { %545 = vperm.xlu1 %825, %v542_v38  }
  0xf8   :  { %476 = vrot.lane.b32.xlu2 %v1064_v28, %s955_s30 }
  0xfa   :  { %v255_v41 = vpop.permute.xlu2 %254 }
  0xff   :  { %573 = vperm.xlu1 %825, %v570_v34  }
 0x100   :  { %480 = vrot.lane.b32.xlu2 %v1071_v32, %s955_s30 }
 0x102   :  { %v1125_v45 = vpop.permute.xlu2 %286 }
 0x107   :  { %828 = vset.pattern.permute.xlu1 %v941_v5  ;;  %v646_v5 = vld [vmem:[%s1337_s10] sm:$0xf] }
 0x108   :  { %559 = vperm.xlu2 %816, %v556_v47   ;;  %609 = vperm.xlu1 %828, %v570_v34   ;;  %v344_v47 = vld [vmem:[#allocation7 + $0x3] ss:$8 sm:$0xf] }
 0x109   :  { %v212_v52 = vpop.permute.xlu1 %211 }
 0x10a   :  { %v216_v48 = vpop.permute.xlu0 %215  ;;  %v293_v49 = vpop.permute.xlu2 %292  ;;  %v224_v54 = vsel %vm221_vm4, %v212_v52, %v214_v37 }
 0x10b   :  { %v223_v50 = vsel %vm221_vm4, %v214_v37, %v216_v48  ;;  %v298_v51 = vsel %vm294_vm5, %v293_v49, %v1125_v45  ;;  %v233_v55 = vmul.f32 %v230_v0, %v224_v54  ;;  %v238_v54 = vperm.slane %v236_v63, 0 }
 0x10c   :  { %v234_v53 = vmul.f32 %v230_v0, %v223_v50 }
 0x10d   :  { %v247_v25 = vmul.f32 %v239_v11, %v233_v55 }
 0x10e   :  { %v248_v24 = vmul.f32 %v240_v3, %v234_v53  ;;  %v303_v53 = vmul.f32 %v1101_v7, %v298_v51 }
 0x110   :  { %826 = vset.pattern.permute.xlu2 %v942_v6  ;;  %830 = vset.pattern.permute.xlu1 %v940_v1  ;;  %v632_v6 = vld [vmem:[%s1336_s9] sm:$0xf]  ;;  %s956_s9 = smov [#allocation8]  }
 0x111   :  { %585 = vperm.xlu2 %826, %v570_v34   ;;  %649 = vperm.xlu1 %830, %v646_v5   ;;  %v218_v58 = vpop.permute.xlu1 %217  ;;  %s776_s16 = sshll.u32 %s956_s9, 4  ;;  %s777_s16 = int_to_ptr.vmem [resolvable:$true] %s776_s16 }
 0x112   :  { %v1147_v56 = vpop.permute.xlu2 %324  ;;  %v251_v57 = vpop.permute.xlu0 %250  ;;  %v222_v59 = vsel %vm221_vm4, %v216_v48, %v218_v58  ;;  %v225_v60 = vsel %vm221_vm4, %v218_v58, %v212_v52  ;;  %v274_v48 = vperm.slane %v272_v2, 0  ;;  %v347_v58 = vperm.slane %v344_v47, 1 }
 0x113   :  { %v232_v61 = vmul.f32 %v230_v0, %v225_v60  ;;  %v235_v62 = vmul.f32 %v230_v0, %v222_v59  ;;  %vm752_vm4 = vcmask 1044480  }
 0x115   :  { %v249_v22 = vmul.f32 %v241_v4, %v235_v62  ;;  %v246_v2 = vmul.f32 %v238_v54, %v232_v61 }
 0x119   :  { %829 = vset.pattern.permute.xlu2 %v940_v1  ;;  %v253_v16 = vpop.permute.xlu1 %252 }
 0x11a   :  { %v1158_v8 = vpop.permute.xlu2 %328  ;;  %v257_v10 = vpop.permute.xlu0 %256  ;;  %635 = vperm.xlu2 %829, %v632_v6   ;;  %v260_v19 = vsel %vm258_vm6, %v253_v16, %v255_v41  ;;  %v261_v1 = vsel %vm258_vm6, %v251_v57, %v253_v16 }
 0x11b   :  { %v259_v12 = vsel %vm258_vm6, %v255_v41, %v257_v10  ;;  %v268_v20 = vmul.f32 %v1108_v36, %v261_v1  ;;  %v269_v21 = vmul.f32 %v1108_v36, %v260_v19  ;;  %v262_v38 = vsel %vm258_vm6, %v257_v10, %v251_v57  ;;  %v308_v41 = vld [vmem:[#allocation7 + $0x2] ss:$8 sm:$0xf] }
 0x11c   :  { %v270_v18 = vmul.f32 %v1108_v36, %v259_v12  ;;  %v267_v50 = vmul.f32 %v1108_v36, %v262_v38  ;;  %v310_v52 = vperm.slane %v308_v41, 0  ;;  %v311_v55 = vperm.slane %v308_v41, 1 }
 0x11d   :  { %v283_v14 = vmul.f32 %v275_v13, %v268_v20  ;;  %v284_v26 = vmul.f32 %v276_v15, %v269_v21  ;;  %v346_v57 = vperm.slane %v344_v47, 0  ;;  %v312_v13 = vperm.slane %v308_v41, 2 }
 0x11e   :  { %v285_v23 = vmul.f32 %v277_v9, %v270_v18  ;;  %v282_v60 = vmul.f32 %v274_v48, %v267_v50  ;;  %v318_v63 = vmul.f32 %v310_v52, %v303_v53  ;;  %v313_v15 = vperm.slane %v308_v41, 3  ;;  %v388_v50 = vld [vmem:[#allocation7 + $0x5] ss:$8 sm:$0xf] }
 0x11f   :  { %v511_v30 = vadd.f32 %v283_v14, %v247_v25  ;;  %v512_v31 = vadd.f32 %v284_v26, %v248_v24  ;;  %v348_v18 = vperm.slane %v344_v47, 2  ;;  %v349_v19 = vperm.slane %v344_v47, 3  ;;  %v1220_v53 = vld [vmem:[#allocation7 + $0x6] ss:$8 sm:$0xf] }
 0x120   :  { %v513_v27 = vadd.f32 %v285_v23, %v249_v22  ;;  %v510_v10 = vadd.f32 %v282_v60, %v246_v2 }
 0x121   :  { %v291_v34 = vpop.permute.xlu1 %290 }
 0x122   :  { %v1169_v33 = vpop.permute.xlu2 %366  ;;  %v295_v0 = vsel %vm294_vm5, %v291_v34, %v293_v49  ;;  %v289_v37 = vpop.permute.xlu0 %288 }
 0x123   :  { %v297_v43 = vsel %vm294_vm5, %v1125_v45, %v289_v37  ;;  %v296_v9 = vsel %vm294_vm5, %v289_v37, %v291_v34  ;;  %v306_v20 = vmul.f32 %v1101_v7, %v295_v0 }
 0x124   :  { %v304_v5 = vmul.f32 %v1101_v7, %v297_v43  ;;  %v305_v1 = vmul.f32 %v1101_v7, %v296_v9 }
 0x125   :  { %v321_v34 = vmul.f32 %v313_v15, %v306_v20  ;;  %v362_v15 = vmul.f32 %v1118_v40, %v1062_v17 }
 0x126   :  { %v319_v6 = vmul.f32 %v311_v55, %v304_v5  ;;  %v320_v26 = vmul.f32 %v312_v13, %v305_v1 }
 0x129   :  { %v323_v59 = vpop.permute.xlu1 %322 }
 0x12a   :  { %v1181_v49 = vpop.permute.xlu2 %370  ;;  %v333_v45 = vsel %vm330_vm7, %v323_v59, %v1147_v56  ;;  %v334_v36 = vsel %vm330_vm7, %v1158_v8, %v323_v59  ;;  %v373_v41 = vpop.permute.xlu0 %372 }
 0x12b   :  { %v339_v51 = vmul.f32 %v1106_v35, %v334_v36  ;;  %v340_v62 = vmul.f32 %v1106_v35, %v333_v45  ;;  %v426_v45 = vperm.slane %v1220_v53, 0 }
 0x12d   :  { %v354_v3 = vmul.f32 %v346_v57, %v339_v51  ;;  %v355_v4 = vmul.f32 %v347_v58, %v340_v62  ;;  %v460_v57 = vld [vmem:[#allocation7 + $0x7] ss:$8 sm:$0xf]  ;;  %v390_v58 = vperm.slane %v388_v50, 0 }
 0x12e   :  { %v462_v62 = vperm.slane %v460_v57, 0 }
 0x12f   :  { %v514_v11 = vadd.f32 %v354_v3, %v318_v63  ;;  %v515_v12 = vadd.f32 %v355_v4, %v319_v6  ;;  %v465_v63 = vperm.slane %v460_v57, 3  ;;  %v375_v6 = vsel %vm374_vm8, %v1181_v49, %v373_v41 }
 0x131   :  { %v1196_v21 = vadd.f32 %v514_v11, %v510_v10  ;;  %v1198_v61 = vadd.f32 %v515_v12, %v511_v30  ;;  %v327_v22 = vpop.permute.xlu1 %326 }
 0x132   :  { %v403_v16 = vpop.permute.xlu2 %402  ;;  %v331_v23 = vsel %vm330_vm7, %v327_v22, %v1158_v8  ;;  %v332_v24 = vsel %vm330_vm7, %v1147_v56, %v327_v22  ;;  %v405_v52 = vpop.permute.xlu0 %404 }
 0x133   :  { %v341_v25 = vmul.f32 %v1106_v35, %v332_v24  ;;  %v342_v14 = vmul.f32 %v1106_v35, %v331_v23  ;;  %v378_v35 = vsel %vm374_vm8, %v373_v41, %v1169_v33  ;;  %v413_v55 = vsel %vm410_vm9, %v403_v16, %v405_v52 }
 0x134   :  { %v386_v54 = vmul.f32 %v1123_v44, %v378_v35  ;;  %v419_v60 = vmul.f32 %v1115_v39, %v413_v55  ;;  %v385_v24 = vmul.f32 %v1123_v44, %v375_v6  ;;  %v464_v41 = vperm.slane %v460_v57, 2 }
 0x135   :  { %v356_v7 = vmul.f32 %v348_v18, %v341_v25  ;;  %v357_v0 = vmul.f32 %v349_v19, %v342_v14  ;;  %v392_v18 = vperm.slane %v388_v50, 2  ;;  %v391_v19 = vperm.slane %v388_v50, 1 }
 0x136   :  { %v434_v1 = vmul.f32 %v426_v45, %v419_v60 }
 0x137   :  { %v516_v37 = vadd.f32 %v356_v7, %v320_v26  ;;  %v517_v30 = vadd.f32 %v357_v0, %v321_v34  ;;  %v427_v7 = vperm.slane %v1220_v53, 1  ;;  %v428_v0 = vperm.slane %v1220_v53, 2 }
 0x139   :  { %v1208_v43 = vadd.f32 %v516_v37, %v512_v31  ;;  %v1210_v47 = vadd.f32 %v517_v30, %v513_v27  ;;  %v369_v8 = vpop.permute.xlu1 %368  ;;  %v393_v27 = vperm.slane %v388_v50, 3  ;;  %v463_v30 = vperm.slane %v460_v57, 1 }
 0x13a   :  { %v409_v38 = vpop.permute.xlu2 %408  ;;  %v377_v31 = vsel %vm374_vm8, %v1169_v33, %v369_v8  ;;  %v429_v33 = vperm.slane %v1220_v53, 3  ;;  %v376_v10 = vsel %vm374_vm8, %v369_v8, %v1181_v49  ;;  %v364_v57 = vmul.f32 %v1118_v40, %v1066_v29  ;;  %v489_v6 = vpop.permute.xlu0 %488 }
 0x13b   :  { %v414_v5 = vsel %vm410_vm9, %v409_v38, %v403_v16  ;;  %v383_v59 = vmul.f32 %v1123_v44, %v377_v31  ;;  %v401_v3 = vmul.f32 %v393_v27, %v386_v54  ;;  %v365_v16 = vmul.f32 %v1118_v40, %v1071_v32 }
 0x13c   :  { %v422_v51 = vmul.f32 %v1115_v39, %v414_v5  ;;  %v384_v49 = vmul.f32 %v1123_v44, %v376_v10  ;;  %v400_v31 = vmul.f32 %v392_v18, %v385_v24 }
 0x13d   :  { %v398_v11 = vmul.f32 %v390_v58, %v383_v59  ;;  %v521_v17 = vadd.f32 %v401_v3, %v365_v16 }
 0x13e   :  { %v437_v20 = vmul.f32 %v429_v33, %v422_v51 }
 0x13f   :  { %v518_v26 = vadd.f32 %v398_v11, %v362_v15 }
 0x141   :  { %v407_v48 = vpop.permute.xlu1 %406 }
 0x142   :  { %v441_v56 = vpop.permute.xlu2 %440  ;;  %v411_v25 = vsel %vm410_vm9, %v407_v48, %v409_v38  ;;  %v412_v14 = vsel %vm410_vm9, %v405_v52, %v407_v48  ;;  %v399_v48 = vmul.f32 %v391_v19, %v384_v49  ;;  %vm757_vm9 = vcmask 1045504  }
 0x143   :  { %v420_v8 = vmul.f32 %v1115_v39, %v412_v14  ;;  %v421_v44 = vmul.f32 %v1115_v39, %v411_v25  ;;  %v363_v39 = vmul.f32 %v1118_v40, %v1064_v28  ;;  %v496_v40 = vld [vmem:[#allocation7 + $0x20] ss:$8 sm:$0xf] }
 0x144   :  { %v498_v3 = vperm.slane %v496_v40, 0  ;;  %v499_v11 = vperm.slane %v496_v40, 1 }
 0x145   :  { %v435_v58 = vmul.f32 %v427_v7, %v420_v8  ;;  %v436_v59 = vmul.f32 %v428_v0, %v421_v44 }
 0x149   :  { %v439_v2 = vpop.permute.xlu1 %438 }
 0x14a   :  { %v445_v36 = vpop.permute.xlu2 %444  ;;  %v449_v4 = vsel %vm446_vm10, %v439_v2, %v441_v56 }
 0x14b   :  { %v450_v9 = vsel %vm446_vm10, %v445_v36, %v439_v2  ;;  %v455_v12 = vmul.f32 %v1121_v42, %v449_v4  ;;  %v501_v4 = vperm.slane %v496_v40, 3 }
 0x14c   :  { %v458_v13 = vmul.f32 %v1121_v42, %v450_v9 }
 0x14d   :  { %v470_v22 = vmul.f32 %v462_v62, %v455_v12  ;;  %v500_v12 = vperm.slane %v496_v40, 2 }
 0x14e   :  { %v473_v23 = vmul.f32 %v465_v63, %v458_v13 }
 0x14f   :  { %v522_v34 = vadd.f32 %v470_v22, %v434_v1 }
 0x150   :  { %v525_v32 = vadd.f32 %v473_v23, %v437_v20 }
 0x151   :  { %v530_v50 = vadd.f32 %v522_v34, %v518_v26  ;;  %v443_v35 = vpop.permute.xlu1 %442 }
 0x152   :  { %v477_v37 = vpop.permute.xlu2 %476  ;;  %v533_v38 = vadd.f32 %v525_v32, %v521_v17  ;;  %v447_v52 = vsel %vm446_vm10, %v443_v35, %v445_v36  ;;  %v448_v27 = vsel %vm446_vm10, %v441_v56, %v443_v35  ;;  %v520_v36 = vadd.f32 %v400_v31, %v364_v57 }
 0x153   :  { %v456_v53 = vmul.f32 %v1121_v42, %v448_v27  ;;  %v457_v54 = vmul.f32 %v1121_v42, %v447_v52  ;;  %v534_v5 = vadd.f32 %v530_v50, %v1196_v21  ;;  %v519_v56 = vadd.f32 %v399_v48, %v363_v39 }
 0x154   :  { %v537_v55 = vadd.f32 %v533_v38, %v1210_v47  ;;  %v1274_v38 = vld [vmem:[#allocation2] sm:$0xff]  ;;  %vm762_vm10 = vcmask 1046528  }
 0x155   :  { %v471_v45 = vmul.f32 %v463_v30, %v456_v53  ;;  %v472_v33 = vmul.f32 %v464_v41, %v457_v54  ;;  %v664_v39 = vperm.slane %v1274_v38, 0 }
 0x157   :  { %v523_v60 = vadd.f32 %v471_v45, %v435_v58  ;;  %v524_v51 = vadd.f32 %v472_v33, %v436_v59 }
 0x159   :  { %v531_v62 = vadd.f32 %v523_v60, %v519_v56  ;;  %v532_v42 = vadd.f32 %v524_v51, %v520_v36  ;;  %v475_v63 = vpop.permute.xlu1 %474  ;;  %v598_v51 = vpop.permute.xlu0 %597 }
 0x15a   :  { %v481_v47 = vpop.permute.xlu2 %480  ;;  %v485_v2 = vsel %vm482_vm11, %v475_v63, %v477_v37 }
 0x15b   :  { %v535_v21 = vadd.f32 %v531_v62, %v1198_v61  ;;  %v536_v28 = vadd.f32 %v532_v42, %v1208_v43  ;;  %v486_v29 = vsel %vm482_vm11, %v481_v47, %v475_v63  ;;  %v491_v9 = vmul.f32 %v489_v6, %v485_v2 }
 0x15c   :  { %v494_v10 = vmul.f32 %v489_v6, %v486_v29 }
 0x15d   :  { %v506_v46 = vmul.f32 %v498_v3, %v491_v9 }
 0x15e   :  { %v509_v1 = vmul.f32 %v501_v4, %v494_v10 }
 0x15f   :  { %v538_v24 = vadd.f32 %v534_v5, %v506_v46 }
 0x160   :  { %v541_v23 = vadd.f32 %v537_v55, %v509_v1 }
 0x161   :  { %v479_v13 = vpop.permute.xlu1 %478 }
 0x162   :  { %v483_v15 = vsel %vm482_vm11, %v479_v13, %v481_v47  ;;  %v484_v16 = vsel %vm482_vm11, %v477_v37, %v479_v13  ;;  %v560_v34 = vpop.permute.xlu2 %559 }
 0x163   :  { %v492_v18 = vmul.f32 %v489_v6, %v484_v16  ;;  %v493_v19 = vmul.f32 %v489_v6, %v483_v15  ;;  %v1277_v15 = vld [vmem:[#allocation2 + $0x8] sm:$0xff] }
 0x165   :  { %v507_v61 = vmul.f32 %v499_v11, %v492_v18  ;;  %v508_v20 = vmul.f32 %v500_v12, %v493_v19 }
 0x167   :  { %v539_v43 = vadd.f32 %v535_v21, %v507_v61  ;;  %v540_v22 = vadd.f32 %v536_v28, %v508_v20 }
 0x169   :  { %v546_v49 = vpop.permute.xlu1 %545 }
 0x16a   :  { %v548_v25 = vadd.f32 %v546_v49, %v538_v24  ;;  %v549_v14 = vadd.f32 %v546_v49, %v539_v43  ;;  %v550_v17 = vadd.f32 %v546_v49, %v540_v22  ;;  %v551_v26 = vadd.f32 %v546_v49, %v541_v23 }
 0x16b   :  { %v586_v27 = vpop.permute.xlu2 %585  ;;  %v665_v23 = vperm.slane %v1274_v38, 4  ;;  %v666_v24 = vperm.slane %v1277_v15, 0  ;;  %v667_v49 = vperm.slane %v1277_v15, 4 }
 0x16c   :  { %vm552_vm12 = vcmp.ge.f32.partialorder %v548_v25, 0.0  ;;  %vm553_vm13 = vcmp.ge.f32.partialorder %v549_v14, 0.0  ;;  %vm554_vm14 = vcmp.ge.f32.partialorder %v550_v17, 0.0  ;;  %vm555_vm15 = vcmp.ge.f32.partialorder %v551_v26, 0.0 }
 0x16d   :  { %v562_v32 = vmul.f32 %v560_v34, %v548_v25  ;;  %v563_v7 = vmul.f32 %v560_v34, %v549_v14  ;;  %v564_v0 = vmul.f32 %v560_v34, %v550_v17  ;;  %v565_v37 = vmul.f32 %v560_v34, %v551_v26 }
 0x16f   :  { %v566_v30 = vsel %vm552_vm12, %v548_v25, %v562_v32  ;;  %v567_v41 = vsel %vm553_vm13, %v549_v14, %v563_v7  ;;  %v568_v8 = vsel %vm554_vm14, %v550_v17, %v564_v0  ;;  %v569_v44 = vsel %vm555_vm15, %v551_v26, %v565_v37 }
 0x170   :  { %v588_v35 = vperm.slane %v566_v30, 1  ;;  %v589_v31 = vperm.slane %v567_v41, 1  ;;  %v590_v48 = vperm.slane %v568_v8, 1  ;;  %v591_v52 = vperm.slane %v569_v44, 1 }
 0x171   :  { %v574_v50 = vpop.permute.xlu1 %573  ;;  %v577_v53 = vperm.slane %v567_v41, 0  ;;  %v578_v54 = vperm.slane %v568_v8, 0  ;;  %v579_v55 = vperm.slane %v569_v44, 0  ;;  %v576_v5 = vperm.slane %v566_v30, 0 }
 0x172   :  { %v600_v57 = vperm.slane %v566_v30, 2  ;;  %v601_v58 = vperm.slane %v567_v41, 2  ;;  %v602_v59 = vperm.slane %v568_v8, 2  ;;  %v603_v45 = vperm.slane %v569_v44, 2 }
 0x173   :  { %v592_v33 = vmul.f32 %v588_v35, %v586_v27  ;;  %v593_v36 = vmul.f32 %v589_v31, %v586_v27  ;;  %v594_v56 = vmul.f32 %v590_v48, %v586_v27  ;;  %v595_v60 = vmul.f32 %v591_v52, %v586_v27 }
 0x174   :  { %v580_v62 = vmul.f32 %v576_v5, %v574_v50  ;;  %v581_v42 = vmul.f32 %v577_v53, %v574_v50  ;;  %v582_v63 = vmul.f32 %v578_v54, %v574_v50  ;;  %v583_v47 = vmul.f32 %v579_v55, %v574_v50  ;;  %v636_v22 = vpop.permute.xlu2 %635 }
 0x175   :  { %v613_v21 = vperm.slane %v567_v41, 3  ;;  %v614_v28 = vperm.slane %v568_v8, 3  ;;  %v615_v2 = vperm.slane %v569_v44, 3  ;;  %v612_v29 = vperm.slane %v566_v30, 3 }
 0x176   :  { %v604_v40 = vmul.f32 %v600_v57, %v598_v51  ;;  %v605_v6 = vmul.f32 %v601_v58, %v598_v51  ;;  %v606_v3 = vmul.f32 %v602_v59, %v598_v51  ;;  %v607_v4 = vmul.f32 %v603_v45, %v598_v51 }
 0x177   :  { %v620_v16 = vadd.f32 %v592_v33, %v580_v62  ;;  %v621_v18 = vadd.f32 %v593_v36, %v581_v42  ;;  %v622_v19 = vadd.f32 %v594_v56, %v582_v63  ;;  %v623_v46 = vadd.f32 %v595_v60, %v583_v47 }
 0x178   :  { %v684_v25 = vperm.slane %v1274_v38, 1  ;;  %v685_v32 = vperm.slane %v1274_v38, 5  ;;  %v686_v7 = vperm.slane %v1277_v15, 1  ;;  %v687_v0 = vperm.slane %v1277_v15, 5 }
 0x179   :  { %v700_v37 = vperm.slane %v1274_v38, 2  ;;  %v701_v50 = vperm.slane %v1274_v38, 6  ;;  %v702_v35 = vperm.slane %v1277_v15, 2  ;;  %v703_v31 = vperm.slane %v1277_v15, 6 }
 0x17a   :  { %v610_v9 = vpop.permute.xlu1 %609  ;;  %v716_v52 = vperm.slane %v1274_v38, 3  ;;  %v717_v27 = vperm.slane %v1274_v38, 7  ;;  %v718_v53 = vperm.slane %v1277_v15, 3  ;;  %v719_v54 = vperm.slane %v1277_v15, 7 }
 0x17b   :  { %v616_v10 = vmul.f32 %v612_v29, %v610_v9  ;;  %v617_v11 = vmul.f32 %v613_v21, %v610_v9  ;;  %v618_v12 = vmul.f32 %v614_v28, %v610_v9  ;;  %v619_v13 = vmul.f32 %v615_v2, %v610_v9 }
 0x17d   :  { %v624_v1 = vadd.f32 %v616_v10, %v604_v40  ;;  %v625_v61 = vadd.f32 %v617_v11, %v605_v6  ;;  %v626_v20 = vadd.f32 %v618_v12, %v606_v3  ;;  %v627_v43 = vadd.f32 %v619_v13, %v607_v4 }
 0x17f   :  { %v628_v14 = vadd.f32 %v624_v1, %v620_v16  ;;  %v629_v17 = vadd.f32 %v625_v61, %v621_v18  ;;  %v630_v26 = vadd.f32 %v626_v20, %v622_v19  ;;  %v631_v34 = vadd.f32 %v627_v43, %v623_v46 }
 0x181   :  { %v638_v30 = vadd.f32 %v636_v22, %v628_v14  ;;  %v639_v41 = vadd.f32 %v636_v22, %v629_v17  ;;  %v640_v8 = vadd.f32 %v636_v22, %v630_v26  ;;  %v641_v44 = vadd.f32 %v636_v22, %v631_v34 }
 0x183   :  { %v650_v48 = vpop.permute.xlu1 %649  ;;  %vm642_vm5 = vcmp.ge.f32.partialorder %v638_v30, 0.0  ;;  %vm643_vm6 = vcmp.ge.f32.partialorder %v639_v41, 0.0  ;;  %vm644_vm7 = vcmp.ge.f32.partialorder %v640_v8, 0.0  ;;  %vm645_vm8 = vcmp.ge.f32.partialorder %v641_v44, 0.0 }
 0x184   :  { %v652_v55 = vmul.f32 %v650_v48, %v638_v30  ;;  %v653_v5 = vmul.f32 %v650_v48, %v639_v41  ;;  %v654_v57 = vmul.f32 %v650_v48, %v640_v8  ;;  %v655_v58 = vmul.f32 %v650_v48, %v641_v44 }
 0x186   :  { %v656_v59 = vsel %vm642_vm5, %v638_v30, %v652_v55  ;;  %v657_v45 = vsel %vm643_vm6, %v639_v41, %v653_v5  ;;  %v658_v33 = vsel %vm644_vm7, %v640_v8, %v654_v57  ;;  %v659_v36 = vsel %vm645_vm8, %v641_v44, %v655_v58 }
 0x187   :  { %v676_v56 = vrot.slane %v656_v59, 7  ;;  %v677_v60 = vrot.slane %v657_v45, 7  ;;  %v678_v51 = vrot.slane %v658_v33, 7  ;;  %v679_v62 = vrot.slane %v659_v36, 7 }
 0x188   :  { %v692_v42 = vrot.slane %v656_v59, 6  ;;  %v693_v63 = vrot.slane %v657_v45, 6  ;;  %v694_v47 = vrot.slane %v658_v33, 6  ;;  %v695_v21 = vrot.slane %v659_v36, 6 }
 0x189   :  { %v708_v28 = vrot.slane %v656_v59, 5  ;;  %v709_v2 = vrot.slane %v657_v45, 5  ;;  %v710_v29 = vrot.slane %v658_v33, 5  ;;  %v711_v40 = vrot.slane %v659_v36, 5 }
 0x18a   :  { %v724_v6 = vrot.slane %v656_v59, 4  ;;  %v725_v3 = vrot.slane %v657_v45, 4  ;;  %v726_v4 = vrot.slane %v658_v33, 4  ;;  %v727_v9 = vrot.slane %v659_v36, 4 }
 0x18b   :  { %v733_v10 = vsel %vm732_vm0, %v664_v39, %v676_v56  ;;  %v734_v11 = vsel %vm732_vm0, %v665_v23, %v677_v60  ;;  %v735_v12 = vsel %vm732_vm0, %v666_v24, %v678_v51  ;;  %v736_v13 = vsel %vm732_vm0, %v667_v49, %v679_v62 }
 0x18c   :  { %v738_v15 = vsel %vm737_vm1, %v733_v10, %v684_v25  ;;  %v739_v16 = vsel %vm737_vm1, %v734_v11, %v685_v32  ;;  %v740_v18 = vsel %vm737_vm1, %v735_v12, %v686_v7  ;;  %v741_v19 = vsel %vm737_vm1, %v736_v13, %v687_v0 }
 0x18d   :  { %v743_v46 = vsel %vm742_vm2, %v738_v15, %v692_v42  ;;  %v744_v38 = vsel %vm742_vm2, %v739_v16, %v693_v63  ;;  %v745_v39 = vsel %vm742_vm2, %v740_v18, %v694_v47  ;;  %v746_v1 = vsel %vm742_vm2, %v741_v19, %v695_v21 }
 0x18e   :  { %v748_v61 = vsel %vm747_vm3, %v743_v46, %v700_v37  ;;  %v749_v20 = vsel %vm747_vm3, %v744_v38, %v701_v50  ;;  %v750_v43 = vsel %vm747_vm3, %v745_v39, %v702_v35  ;;  %v751_v22 = vsel %vm747_vm3, %v746_v1, %v703_v31 }
 0x18f   :  { %v753_v23 = vsel %vm752_vm4, %v748_v61, %v708_v28  ;;  %v754_v24 = vsel %vm752_vm4, %v749_v20, %v709_v2  ;;  %v755_v49 = vsel %vm752_vm4, %v750_v43, %v710_v29  ;;  %v756_v25 = vsel %vm752_vm4, %v751_v22, %v711_v40 }
 0x190   :  { %v758_v14 = vsel %vm757_vm9, %v753_v23, %v716_v52  ;;  %v759_v17 = vsel %vm757_vm9, %v754_v24, %v717_v27  ;;  %v760_v26 = vsel %vm757_vm9, %v755_v49, %v718_v53  ;;  %v761_v34 = vsel %vm757_vm9, %v756_v25, %v719_v54 }
 0x191   :  { %v763_v32 = vsel %vm762_vm10, %v758_v14, %v724_v6  ;;  %v764_v7 = vsel %vm762_vm10, %v759_v17, %v725_v3  ;;  %v765_v0 = vsel %vm762_vm10, %v760_v26, %v726_v4  ;;  %v766_v37 = vsel %vm762_vm10, %v761_v34, %v727_v9 }
 0x192   :  { %767 = vst [vmem:[#allocation8] sm:$0xff] %v763_v32 }
 0x193   :  { %768 = vst [vmem:[#allocation8 + $0x8] sm:$0xff] %v764_v7 }
 0x194   :  { %769 = vst [vmem:[#allocation8 + $0x10] sm:$0xff] %v765_v0 }
 0x195   :  { %770 = vst [vmem:[#allocation8 + $0x18] sm:$0xff] %v766_v37 }
 0x196   :  { %781 = dma.vmem_to_hbm [thread:$0]  %s777_s16, 512, %s779_s0, [#allocation4]  }
 0x197   :  { %932 = dma.done.wait [#allocation4], 512  }
 0x198   :  { %933 = vsyncadd [#allocation4], 4294966784 }
 0x199   :  { %786 = vsyncpa [#allocation3], 1 }
 0x19a   :  { %787 = vsyncpa [#allocation6], 1 }
 0x19b   :  { %788 = vsyncpa [#allocation4], 1 }

</bundles_post_ra>
